<compile_context>
chip_gen: v6e
topology: v6e:2x2x1
jax: 0.10.0
libtpu: 0.0.40
codegen_flags: <defaults>
</compile_context>

<pallas_src>
import jax
import jax.numpy as jnp
from jax.experimental import pallas as pl
from jax.experimental.pallas import tpu as pltpu


def _pooling_kernel(x_ref, w_ref, b_ref, o_ref, acc_ref):
    # x_ref:   (tile_b, C, tile_hw)  flattened-spatial tile, lane-dense in HW
    # w_ref:   (O, C)                nn.Linear weight, untransposed
    # b_ref:   (1, O)                bias kept 2-D for TPU layout
    # o_ref:   (tile_b, O)           output block (resident across reduction)
    # acc_ref: (tile_b, C) f32       running spatial sums (VMEM scratch)
    k = pl.program_id(1)

    @pl.when(k == 0)
    def _():
        acc_ref[...] = jnp.zeros_like(acc_ref)

    # Partial spatial sum over this HW tile.  Only the tiny (tile_b, C) partial
    # is converted to f32; the full input tile is never upcast/materialized.
    acc_ref[...] += jnp.sum(x_ref[...], axis=-1).astype(jnp.float32)

    @pl.when(k == pl.num_programs(1) - 1)
    def _():
        pooled = acc_ref[...]                                 # (tile_b, C) f32
        # Linear: contract pooled dim 1 with weight dim 1 (MXU handles the
        # transposed-RHS contraction natively; no wrapper transpose needed).
        out = jax.lax.dot_general(
            pooled, w_ref[...].astype(jnp.float32),
            dimension_numbers=(((1,), (1,)), ((), ())),
            preferred_element_type=jnp.float32)               # (tile_b, O)
        out = out + b_ref[...].astype(jnp.float32)
        # TODO(synk): for large B with tiny O, pad O to 128 in the wrapper so
        # this store is lane-dense (vst instead of vst.msk); negligible here.
        o_ref[...] = out.astype(o_ref.dtype)


def pooling_forward(x, weight, bias, *, tile_b=None, tile_hw=None,
                    vmem_limit_bytes=32 * 1024 * 1024):
    """x: (B, C, H, W); weight: (O, C); bias: (O,) -> (B, O)."""
    B, C, H, W = x.shape
    O = weight.shape[0]
    HW = H * W

    # Free, contiguous NCHW reshape: spatial dims flattened onto the lane axis.
    x3 = x.reshape(B, C, HW)
    b2 = bias.reshape(1, O)

    # ---- tile selection -----------------------------------------------------
    # Reduction (HW) tile: largest multiple of 128 dividing HW, capped at 512
    # (measured HBM-roofline sweet spot); fall back to the full extent.
    if tile_hw is None:
        tile_hw = HW
        if HW % 128 == 0:
            for cand in (512, 384, 256, 128):
                if HW % cand == 0:
                    tile_hw = cand
                    break
    # Batch tile: either the full batch or a multiple of 8 (sublane rule on the
    # (tile_b, O) output block).  Keep 2x double-buffered x blocks small so the
    # same tiling also fits v7x's 64 MiB VMEM with large headroom.
    if tile_b is None:
        tile_b = B
        if B % 8 == 0:
            itemsize = jnp.dtype(x.dtype).itemsize
            for cand in (64, 32, 16, 8):
                if B % cand == 0 and 2 * cand * C * tile_hw * itemsize <= (4 << 20):
                    tile_b = cand
                    break

    grid = (B // tile_b, HW // tile_hw)   # reduction axis last

    return pl.pallas_call(
        _pooling_kernel,
        out_shape=jax.ShapeDtypeStruct((B, O), x.dtype),
        grid_spec=pltpu.PrefetchScalarGridSpec(
            num_scalar_prefetch=0,
            grid=grid,
            in_specs=[
                pl.BlockSpec((tile_b, C, tile_hw), lambda i, k: (i, 0, k)),
                pl.BlockSpec((O, C), lambda i, k: (0, 0)),
                pl.BlockSpec((1, O), lambda i, k: (0, 0)),
            ],
            out_specs=pl.BlockSpec((tile_b, O), lambda i, k: (i, 0)),
            scratch_shapes=[pltpu.VMEM((tile_b, C), jnp.float32)],
        ),
        compiler_params=pltpu.CompilerParams(
            dimension_semantics=("parallel", "arbitrary"),
            vmem_limit_bytes=vmem_limit_bytes,
        ),
    )(x3, weight, b2)


if __name__ == "__main__":
    # Small shapes consistent with the module: NCHW input.
    B, C, H, W = 2, 4, 16, 16
    OUT = 8

    key = jax.random.PRNGKey(0)
    kx, kw, kb = jax.random.split(key, 3)

    x = jax.random.normal(kx, (B, C, H, W), dtype=jnp.float32)

    # Deterministic nn.Linear-style init: U(-1/sqrt(C), 1/sqrt(C))
    bound = 1.0 / jnp.sqrt(jnp.float32(C))
    weight = jax.random.uniform(kw, (OUT, C), dtype=jnp.float32,
                                minval=-bound, maxval=bound)
    bias = jax.random.uniform(kb, (OUT,), dtype=jnp.float32,
                              minval=-bound, maxval=bound)

    out = pooling_forward(x, weight, bias)
    jax.block_until_ready(out)

    # Pure-JAX reference check.
    ref = jnp.sum(x, axis=(-1, -2)) @ weight.T + bias
    assert out.shape == (B, OUT)
    assert jnp.allclose(out, ref, atol=1e-3, rtol=1e-4)

    print("KERNEL_OK")
</pallas_src>

<mosaic_0001>
module attributes {stable_mosaic.version = 11 : i64} {
  func.func @_pooling_kernel(%arg0: i32, %arg1: i32, %arg2: memref<2x4x256xf32, #tpu.memory_space<vmem>>, %arg3: memref<8x4xf32, #tpu.memory_space<vmem>>, %arg4: memref<1x8xf32, #tpu.memory_space<vmem>>, %arg5: memref<2x8xf32, #tpu.memory_space<vmem>>, %arg6: memref<2x4xf32, #tpu.memory_space<vmem>>) attributes {dimension_semantics = [#tpu.dimension_semantics<parallel>, #tpu.dimension_semantics<arbitrary>], iteration_bounds = array<i64: 1, 1>, scalar_prefetch = 0 : i64, scratch_operands = 1 : i64, tpu.core_type = #tpu.core_type<tc>, window_params = [{transform_indices = @transform_0, window_bounds = array<i64: 2, 4, 256>}, {pipeline_mode = #tpu.pipeline_mode<synchronous>, transform_indices = @transform_1, window_bounds = array<i64: 8, 4>}, {pipeline_mode = #tpu.pipeline_mode<synchronous>, transform_indices = @transform_2, window_bounds = array<i64: 1, 8>}, {transform_indices = @transform_3, window_bounds = array<i64: 2, 8>}]} {
    %c0_i32 = arith.constant 0 : i32
    %0 = arith.cmpi eq, %arg1, %c0_i32 : i32
    %1 = arith.extui %0 : i1 to i32
    %c0_i32_0 = arith.constant 0 : i32
    %2 = arith.cmpi ne, %1, %c0_i32_0 : i32
    scf.if %2 {
      %cst_9 = arith.constant 0.000000e+00 : f32
      %11 = vector.broadcast %cst_9 : f32 to vector<2x4xf32>
      %c0_10 = arith.constant 0 : index
      %c0_11 = arith.constant 0 : index
      %12 = vector.load %arg6[%c0_10, %c0_11] : memref<2x4xf32, #tpu.memory_space<vmem>>, vector<2x4xf32>
      tpu.vector_store %arg6[%c0_10, %c0_11], %11 {strides = array<i32>} : memref<2x4xf32, #tpu.memory_space<vmem>>, vector<2x4xf32>,
    } else {
    }
    %c0 = arith.constant 0 : index
    %c0_1 = arith.constant 0 : index
    %3 = vector.load %arg6[%c0, %c0_1] : memref<2x4xf32, #tpu.memory_space<vmem>>, vector<2x4xf32>
    %c0_2 = arith.constant 0 : index
    %c0_3 = arith.constant 0 : index
    %c0_4 = arith.constant 0 : index
    %4 = vector.load %arg2[%c0_2, %c0_3, %c0_4] : memref<2x4x256xf32, #tpu.memory_space<vmem>>, vector<2x4x256xf32>
    %cst = arith.constant dense<0.000000e+00> : vector<2x4xf32>
    %5 = vector.multi_reduction <add>, %4, %cst [2] : vector<2x4x256xf32> to vector<2x4xf32>
    %6 = arith.addf %3, %5 : vector<2x4xf32>
    %c0_5 = arith.constant 0 : index
    %c0_6 = arith.constant 0 : index
    %7 = vector.load %arg6[%c0_5, %c0_6] : memref<2x4xf32, #tpu.memory_space<vmem>>, vector<2x4xf32>
    tpu.vector_store %arg6[%c0_5, %c0_6], %6 {strides = array<i32>} : memref<2x4xf32, #tpu.memory_space<vmem>>, vector<2x4xf32>,
    %c0_i32_7 = arith.constant 0 : i32
    %8 = arith.cmpi eq, %arg1, %c0_i32_7 : i32
    %9 = arith.extui %8 : i1 to i32
    %c0_i32_8 = arith.constant 0 : i32
    %10 = arith.cmpi ne, %9, %c0_i32_8 : i32
    scf.if %10 {
      %c0_9 = arith.constant 0 : index
      %c0_10 = arith.constant 0 : index
      %11 = vector.load %arg6[%c0_9, %c0_10] : memref<2x4xf32, #tpu.memory_space<vmem>>, vector<2x4xf32>
      %c0_11 = arith.constant 0 : index
      %c0_12 = arith.constant 0 : index
      %12 = vector.load %arg3[%c0_11, %c0_12] : memref<8x4xf32, #tpu.memory_space<vmem>>, vector<8x4xf32>
      %cst_13 = arith.constant dense<0.000000e+00> : vector<2x8xf32>
      %13 = tpu.matmul %11, %12, %cst_13 {dimension_numbers = #tpu.dot_dimension_numbers<[1], [1], [0], [0], [0, 0, 1, 0], [], []>} : vector<2x4xf32>, vector<8x4xf32>, vector<2x8xf32> -> vector<2x8xf32>
      %c0_14 = arith.constant 0 : index
      %c0_15 = arith.constant 0 : index
      %14 = vector.load %arg4[%c0_14, %c0_15] : memref<1x8xf32, #tpu.memory_space<vmem>>, vector<1x8xf32>
      %15 = vector.broadcast %14 : vector<1x8xf32> to vector<2x8xf32>
      %16 = arith.addf %13, %15 : vector<2x8xf32>
      %c0_16 = arith.constant 0 : index
      %c0_17 = arith.constant 0 : index
      %17 = vector.load %arg5[%c0_16, %c0_17] : memref<2x8xf32, #tpu.memory_space<vmem>>, vector<2x8xf32>
      tpu.vector_store %arg5[%c0_16, %c0_17], %16 {strides = array<i32>} : memref<2x8xf32, #tpu.memory_space<vmem>>, vector<2x8xf32>,
    } else {
    }
    return
  }
  func.func @transform_0(%arg0: i32, %arg1: i32) -> (i32, i32, i32) {
    %c0_i32 = arith.constant 0 : i32
    %c0_i32_0 = arith.constant 0 : i32
    return %arg0, %c0_i32, %arg1 : i32, i32, i32
  }
  func.func @transform_1(%arg0: i32, %arg1: i32) -> (i32, i32) {
    %c0_i32 = arith.constant 0 : i32
    %c0_i32_0 = arith.constant 0 : i32
    %c0_i32_1 = arith.constant 0 : i32
    return %c0_i32, %c0_i32_0 : i32, i32
  }
  func.func @transform_2(%arg0: i32, %arg1: i32) -> (i32, i32) {
    %c0_i32 = arith.constant 0 : i32
    %c0_i32_0 = arith.constant 0 : i32
    %c0_i32_1 = arith.constant 0 : i32
    return %c0_i32, %c0_i32_0 : i32, i32
  }
  func.func @transform_3(%arg0: i32, %arg1: i32) -> (i32, i32) {
    %c0_i32 = arith.constant 0 : i32
    %c0_i32_0 = arith.constant 0 : i32
    return %arg0, %c0_i32 : i32, i32
  }
}

</mosaic_0001>

<bundles_post_ra>
// kernel: tpu_custom_call.1
= control target key start
LH: loop header
LB: loop body
LE: loop exit
PB: predicated region body
PF: predicated region fallthrough
CT: control target
= control target key end

     0   :  { %8 = vsyncpa [#allocation4], 0  ;;  %s283_s0 = inlined_call_operand.hbm [shape: f32[2,4,256], index: 0, kind: input, shape index: {}]   ;;  %s284_s1 = inlined_call_operand.vmem [shape: f32[8,4], index: 1, kind: input, shape index: {}]   ;;  %s285_s2 = inlined_call_operand.vmem [shape: f32[1,8], index: 2, kind: input, shape index: {}]   ;;  %s286_s3 = inlined_call_operand.hbm [shape: f32[2,8], index: 3, kind: output, shape index: {}]  }
   0x1   :  { %9 = vsyncpa [#allocation5], 0  ;;  %s241_s12 = smov [#allocation3]  }
   0x2   :  { %s15_s13 = sshll.u32 %s241_s12, 4  ;;  %s16_s13 = int_to_ptr.vmem [resolvable:$true] %s15_s13 }
   0x3   :  { %s205_s14 = scalar_lea.vmem %s16_s13, 256  ;;  %p210_p1 = scmp.lt.s32.totalorder %s16_s13, %s16_s13 }
   0x4   :  { %p206_p0 = scmp.ne.s32.totalorder %s16_s13, %s205_s14  ;;  %p211_p2 = scmp.lt.s32.totalorder %s205_s14, %s205_s14 }
   0x6   :  { %p212_p3 = por %p211_p2, %p210_p1 }
   0x8   :  { %p213_p4 = pnand %p212_p3, %p206_p0 }
   0xa   :  { %216 = shalt.err (!%p213_p4)
}
   0xb   :  { %s242_s15 = smov 128   ;;  %s243_s16 = smov 8  }
   0xc   :  { %21 = dma.hbm_to_vmem [thread:$0]  %s283_s0, 256, %s16_s13, [#allocation4], %s242_s15, %s242_s15, %s243_s16  }
   0xd   :  { %237 = dma.done.wait [#allocation4], 256  }
   0xe   :  { %238 = vsyncadd [#allocation4], 4294967040  ;;  %vm44_vm0 = vcmask 1043456   ;;  %v36_v0 = vld [vmem:[#allocation3] sm:$0xff]  ;;  %v37_v1 = vld [vmem:[#allocation3 + $0x8] sm:$0xff]  ;;  %vm33_vm1 = vcmask 25600   ;;  %v57_v12 = vlaneseq }
   0xf   :  { %v40_v2 = vcombine.high %v36_v0, %v36_v0  ;;  %v45_v3 = vsel %vm44_vm0, %v36_v0, 0.0  ;;  %v41_v4 = vcombine.high %v37_v1, %v37_v1  ;;  %v50_v6 = vsel %vm44_vm0, %v37_v1, 0.0  ;;  %v77_v11 = vld [vmem:[%s284_s1] sm:$0xff]  ;;  %s246_s21 = smov [#allocation6]  }
  0x10   :  { %v244_v10 = vmov 0.0   ;;  %vm85_vm2 = vcmask 31744   ;;  %vm245_vm3 = vmmov 0   ;;  %v58_v13 = vand.u32 127, %v57_v12  ;;  %v179_v24 = vld [vmem:[%s285_s2] ss:$0 sm:$0xff] }
  0x11   :  { %v46_v5 = vsel %vm44_vm0, %v40_v2, 0.0  ;;  %v51_v7 = vsel %vm44_vm0, %v41_v4, 0.0  ;;  %34 = vst.msk [vmem:[#allocation2] sm:$0x3] %vm33_vm1, %v244_v10  ;;  %184 = vmatprep.subr.mxu0 %v244_v10  ;;  %186 = vmatprep.mubr.msk.f32.mxu0 %vm245_vm3, %v244_v10  ;;  %v60_v14 = vshrl.u32 %v57_v12, 7  ;;  %vm67_vm4 = vcmask 1041409  }
  0x12   :  { %v47_v8 = vadd.f32 %v46_v5, %v45_v3  ;;  %v52_v9 = vadd.f32 %v51_v7, %v50_v6  ;;  %185 = vmatpush3.xpose.msk.msra.mxu0 %vm85_vm2, %v77_v11  ;;  %s170_s22 = sshll.u32 %s246_s21, 4  ;;  %vm162_vm5 = vcmask 58368   ;;  %s171_s22 = int_to_ptr.vmem [resolvable:$true] %s170_s22 }
  0x13   :  { %v61_v16 = vsub.s32 %v58_v13, %v60_v14  ;;  %s217_s23 = scalar_lea.vmem %s171_s22, 32  ;;  %p222_p6 = scmp.lt.s32.totalorder %s171_s22, %s171_s22 }
  0x14   :  { %48 = vadd.xlane.f32.xlu0 %v47_v8  ;;  %p218_p5 = scmp.ne.s32.totalorder %s171_s22, %s217_s23  ;;  %p223_p7 = scmp.lt.s32.totalorder %s217_s23, %s217_s23 }
  0x16   :  { %p224_p8 = por %p223_p7, %p222_p6 }
  0x18   :  { %53 = vadd.xlane.f32.xlu0 %v52_v9  ;;  %v35_v20 = vld [vmem:[#allocation2] sm:$0x3]  ;;  %p225_p9 = pnand %p224_p8, %p218_p5 }
  0x9d   :  { %v49_v15 = vpop.xlane.xlu0 %48 }
  0x9e   :  { %v62_v18 = vrot.slane %v49_v15, %v61_v16 }
  0xa1   :  { %v54_v17 = vpop.xlane.xlu0 %53 }
  0xa2   :  { %v66_v19 = vrot.slane %v54_v17, %v61_v16 }
  0xa4   :  { %v68_v21 = vsel %vm67_vm4, %v66_v19, %v62_v18 }
  0xa5   :  { %v70_v22 = vadd.f32 %v68_v21, %v35_v20 }
  0xa7   :  { %72 = vst.msk [vmem:[#allocation2] sm:$0x3] %vm33_vm1, %v70_v22 }
  0xae   :  { %v76_v23 = vld [vmem:[#allocation2] sm:$0x3] }
  0xaf   :  { %187 = vmatmul.mubr.msk.f32.vlgmr.msra.gmra.mxu0 %vm85_vm2, %v76_v23 }
 0x16f   :  { %v158_v25 = vpop.f32.mrf.mxu0 }
 0x170   :  { %v159_v26 = vadd.f32 %v179_v24, %v158_v25 }
 0x171   :  { %v188_v27 = vpop.f32.mrf.mxu0 }
 0x172   :  { %163 = vst.msk [vmem:[#allocation6] sm:$0x3] %vm162_vm5, %v159_v26 }
 0x173   :  { %228 = shalt.err (!%p225_p9)
}
 0x174   :  { %173 = dma.vmem_to_hbm [thread:$0]  %s171_s22, 32, %s286_s3, [#allocation5]  }
 0x175   :  { %239 = dma.done.wait [#allocation5], 32  }
 0x176   :  { %240 = vsyncadd [#allocation5], 4294967264 }
 0x177   :  { %177 = vsyncpa [#allocation4], 1 }
 0x178   :  { %178 = vsyncpa [#allocation5], 1 }

</bundles_post_ra>
